<compile_context>
chip_gen: v7x
topology: tpu7x:2x2x1
jax: 0.10.0
libtpu: 0.0.40
codegen_flags: <defaults>
</compile_context>

<pallas_src>
import jax
import jax.numpy as jnp
from jax.experimental import pallas as pl
from jax.experimental.pallas import tpu as pltpu

_LANE = 128
_SUB = 8


def _bce_dice_kernel(x_ref, t_ref,                    # inputs  (C, tile_rows, 128)
                     inter_ref, denom_ref, bce_ref,   # outputs (C,1), (C,1), (1,1)
                     inter_acc, denom_acc, bce_acc):  # scratch (C,8,128),(C,8,128),(8,128)
    C, tr, L = x_ref.shape
    n_slab = tr // _SUB
    t_idx = pl.program_id(1)

    x = x_ref[...].astype(jnp.float32)   # logits
    t = t_ref[...].astype(jnp.float32)   # targets (zero in any pad region)

    # --- BCEWithLogitsLoss, numerically stable: max(x,0) - x*t + log(1+exp(-|x|)) ---
    bce_elem = jnp.maximum(x, 0.0) - x * t + jnp.log(1.0 + jnp.exp(-jnp.abs(x)))

    # --- softmax over the channel axis (leading, non-vreg axis): unrolled -> VALU/EUP ---
    x_max = x[0]
    for c in range(1, C):
        x_max = jnp.maximum(x_max, x[c])
    e = jnp.exp(x - x_max[None])
    s = e[0]
    for c in range(1, C):
        s = s + e[c]
    p = e * (1.0 / s)[None]              # one exact divide (keeps 1e-5 tolerance)

    # --- per-step partial reduction: collapse tile_rows to one (8,128) slab per
    #     channel via vreg-aligned static slices + VALU adds.  No XLU work here;
    #     cross-lane/sublane reductions are deferred to the finalize step. ---
    def slab_sum(v):                     # (..., tr, L) -> (..., 8, L)
        acc = v[..., 0:_SUB, :]
        for sl in range(1, n_slab):
            acc = acc + v[..., sl * _SUB:(sl + 1) * _SUB, :]
        return acc

    inter_part = slab_sum(p * t)                         # (C, 8, L)
    denom_part = slab_sum(p * p + t * t)                 # (C, 8, L)
    bce_c = bce_elem[0]
    for c in range(1, C):                                # BCE only needs a grand total
        bce_c = bce_c + bce_elem[c]
    bce_part = slab_sum(bce_c)                           # (8, L)

    @pl.when(t_idx == 0)
    def _():                                             # direct write: no zero-init pass
        inter_acc[...] = inter_part
        denom_acc[...] = denom_part
        bce_acc[...] = bce_part

    @pl.when(t_idx > 0)
    def _():
        inter_acc[...] += inter_part
        denom_acc[...] += denom_part
        bce_acc[...] += bce_part

    @pl.when(t_idx == pl.num_programs(1) - 1)
    def _():                                             # only XLU reductions, once per batch
        inter_ref[...] = jnp.sum(inter_acc[...], axis=-1).sum(axis=-1, keepdims=True)
        denom_ref[...] = jnp.sum(denom_acc[...], axis=-1).sum(axis=-1, keepdims=True)
        b = jnp.sum(bce_acc[...], axis=-1, keepdims=True)        # (8, 1)
        bce_ref[...] = jnp.sum(b, axis=0, keepdims=True)         # (1, 1)


def _round_up(v, m):
    return ((v + m - 1) // m) * m


def bce_dice_loss(logits, target, alpha, beta, *, max_tile_rows=512, epsilon=1e-6):
    """logits, target: (N, C, H, W). Returns scalar f32 loss."""
    N, C, H, W = logits.shape
    assert target.shape == logits.shape
    HW = H * W

    # --- tile sizing: rows of 128 lanes.  After the accumulator shrink the only large
    #     live VMEM is the two double-buffered input blocks; a 20 MiB input budget
    #     under an explicit 32 MiB scoped limit is safe on every TPU generation. ---
    R = pl.cdiv(HW, _LANE)
    itembytes = logits.dtype.itemsize + target.dtype.itemsize
    n_buf = 2                                      # BlockSpec double buffering
    per_row_live = n_buf * C * _LANE * itembytes   # both inputs, all pipeline buffers
    budget = 20 * 1024 * 1024
    cap = max(_SUB, ((budget // per_row_live) // _SUB) * _SUB)
    tile_rows = min(max_tile_rows, cap, _round_up(R, _SUB))
    T = pl.cdiv(R, tile_rows)
    R_pad = T * tile_rows
    HW_pad = R_pad * _LANE
    pad = HW_pad - HW

    # --- free reshape (no transpose, no dtype upcast): NCHW -> (N, C, R_pad, 128) ---
    x3 = logits.reshape(N, C, HW)
    t3 = target.reshape(N, C, HW)
    if pad:
        x3 = jnp.pad(x3, ((0, 0), (0, 0), (0, pad)))
        t3 = jnp.pad(t3, ((0, 0), (0, 0), (0, pad)))
    x4 = x3.reshape(N, C, R_pad, _LANE)
    t4 = t3.reshape(N, C, R_pad, _LANE)

    # TODO(synk): v7x-only knobs from the review left out to keep the kernel portable:
    # split the hw-tile range over a second "parallel" grid axis when N==1 (both TCs
    # busy) and pipeline_mode=pl.Buffered(3) on the input specs for deeper DMA overlap.
    in_spec = pl.BlockSpec((pl.Squeezed(), C, tile_rows, _LANE),
                           lambda n, t: (n, 0, t, 0))

    inter_p, denom_p, bce_p = pl.pallas_call(
        _bce_dice_kernel,
        out_shape=(
            jax.ShapeDtypeStruct((N, C, 1), jnp.float32),   # per-batch per-channel intersect
            jax.ShapeDtypeStruct((N, C, 1), jnp.float32),   # per-batch per-channel denominator
            jax.ShapeDtypeStruct((N, 1, 1), jnp.float32),   # per-batch BCE sum
        ),
        grid_spec=pltpu.PrefetchScalarGridSpec(
            num_scalar_prefetch=0,
            grid=(N, T),                                    # reduction (hw) axis last
            in_specs=[in_spec, in_spec],
            out_specs=(
                pl.BlockSpec((pl.Squeezed(), C, 1), lambda n, t: (n, 0, 0)),
                pl.BlockSpec((pl.Squeezed(), C, 1), lambda n, t: (n, 0, 0)),
                pl.BlockSpec((pl.Squeezed(), 1, 1), lambda n, t: (n, 0, 0)),
            ),
            scratch_shapes=[
                pltpu.VMEM((C, _SUB, _LANE), jnp.float32),  # intersection accumulator
                pltpu.VMEM((C, _SUB, _LANE), jnp.float32),  # denominator accumulator
                pltpu.VMEM((_SUB, _LANE), jnp.float32),     # BCE accumulator (channel-summed)
            ],
        ),
        compiler_params=pltpu.CompilerParams(
            dimension_semantics=("parallel", "arbitrary"),
            vmem_limit_bytes=32 * 1024 * 1024,
        ),
    )(x4, t4)

    # --- tiny final combine in JAX ---
    inter = jnp.sum(inter_p[:, :, 0], axis=0)       # (C,)
    denom = jnp.sum(denom_p[:, :, 0], axis=0)       # (C,)
    bce_sum = jnp.sum(bce_p)

    if pad:
        # Exact analytic removal of the zero-pad contributions (softmax normalization):
        # for a pad element x=0, t=0 -> p_c = 1/C (adds 1/C^2 to every channel's denom),
        # p_c * t_c = 0 (intersection unaffected), bce adds log(2) per channel.
        total_pad = jnp.float32(N * pad)
        denom = denom - total_pad / jnp.float32(C * C)
        bce_sum = bce_sum - total_pad * jnp.float32(C) * jnp.log(jnp.float32(2.0))

    dice = 2.0 * inter / jnp.maximum(denom, jnp.float32(epsilon))
    dice_loss = 1.0 - jnp.mean(dice)
    bce_mean = bce_sum / jnp.float32(N * C * H * W)
    return jnp.float32(alpha) * bce_mean + jnp.float32(beta) * dice_loss


def _reference(logits, target, alpha, beta, epsilon=1e-6):
    x = logits.astype(jnp.float32)
    t = target.astype(jnp.float32)
    bce = jnp.mean(jnp.maximum(x, 0.0) - x * t + jnp.log1p(jnp.exp(-jnp.abs(x))))
    p = jax.nn.softmax(x, axis=1)
    N, C, H, W = x.shape
    pf = jnp.transpose(p, (1, 0, 2, 3)).reshape(C, -1)
    tf = jnp.transpose(t, (1, 0, 2, 3)).reshape(C, -1)
    intersect = jnp.sum(pf * tf, axis=-1)
    denom = jnp.sum(pf * pf, axis=-1) + jnp.sum(tf * tf, axis=-1)
    dice = 2.0 * intersect / jnp.maximum(denom, epsilon)
    return alpha * bce + beta * (1.0 - jnp.mean(dice))


if __name__ == "__main__":
    key = jax.random.PRNGKey(0)
    k1, k2 = jax.random.split(key)
    N, C, H, W = 2, 4, 16, 16
    logits = jax.random.normal(k1, (N, C, H, W), dtype=jnp.float32)
    # targets in [0, 1] (soft labels), as BCEWithLogitsLoss / Dice expect
    target = jax.random.uniform(k2, (N, C, H, W), dtype=jnp.float32)

    alpha, beta = 0.5, 1.0  # deterministic loss-combination weights
    # TODO(synk): 'sigmoid'/'none' normalization variants and the optional per-channel
    # `weight` buffer of _AbstractDiceLoss are not wired into this (softmax) kernel.

    loss = bce_dice_loss(logits, target, alpha, beta)
    loss = jax.block_until_ready(loss)

    ref = _reference(logits, target, alpha, beta)
    assert jnp.allclose(loss, ref, atol=1e-5, rtol=1e-5), (loss, ref)

    print("KERNEL_OK")
</pallas_src>

<mosaic_0001>
module attributes {stable_mosaic.version = 11 : i64} {
  func.func @_bce_dice_kernel(%arg0: i32, %arg1: i32, %arg2: memref<1x4x8x128xf32, #tpu.memory_space<vmem>>, %arg3: memref<1x4x8x128xf32, #tpu.memory_space<vmem>>, %arg4: memref<1x4x1xf32, #tpu.memory_space<vmem>>, %arg5: memref<1x4x1xf32, #tpu.memory_space<vmem>>, %arg6: memref<1x1x1xf32, #tpu.memory_space<vmem>>, %arg7: memref<4x8x128xf32, #tpu.memory_space<vmem>>, %arg8: memref<4x8x128xf32, #tpu.memory_space<vmem>>, %arg9: memref<8x128xf32, #tpu.memory_space<vmem>>) attributes {dimension_semantics = [#tpu.dimension_semantics<parallel>, #tpu.dimension_semantics<arbitrary>], iteration_bounds = array<i64: 2, 1>, scalar_prefetch = 0 : i64, scratch_operands = 3 : i64, tpu.core_type = #tpu.core_type<tc>, window_params = [{transform_indices = @transform_0, window_bounds = array<i64: 1, 4, 8, 128>}, {transform_indices = @transform_1, window_bounds = array<i64: 1, 4, 8, 128>}, {transform_indices = @transform_2, window_bounds = array<i64: 1, 4, 1>}, {transform_indices = @transform_3, window_bounds = array<i64: 1, 4, 1>}, {transform_indices = @transform_4, window_bounds = array<i64: 1, 1, 1>}]} {
    %c0 = arith.constant 0 : index
    %c0_0 = arith.constant 0 : index
    %c0_1 = arith.constant 0 : index
    %c0_2 = arith.constant 0 : index
    %0 = vector.load %arg2[%c0, %c0_0, %c0_1, %c0_2] : memref<1x4x8x128xf32, #tpu.memory_space<vmem>>, vector<1x4x8x128xf32>
    %1 = vector.shape_cast %0 : vector<1x4x8x128xf32> to vector<4x8x128xf32>
    %c0_3 = arith.constant 0 : index
    %c0_4 = arith.constant 0 : index
    %c0_5 = arith.constant 0 : index
    %c0_6 = arith.constant 0 : index
    %2 = vector.load %arg3[%c0_3, %c0_4, %c0_5, %c0_6] : memref<1x4x8x128xf32, #tpu.memory_space<vmem>>, vector<1x4x8x128xf32>
    %3 = vector.shape_cast %2 : vector<1x4x8x128xf32> to vector<4x8x128xf32>
    %cst = arith.constant 0.000000e+00 : f32
    %4 = vector.broadcast %cst : f32 to vector<4x8x128xf32>
    %5 = arith.maximumf %1, %4 : vector<4x8x128xf32>
    %6 = arith.mulf %1, %3 : vector<4x8x128xf32>
    %7 = arith.subf %5, %6 : vector<4x8x128xf32>
    %8 = math.absf %1 : vector<4x8x128xf32>
    %cst_7 = arith.constant 0.000000e+00 : f32
    %9 = vector.broadcast %cst_7 : f32 to vector<4x8x128xf32>
    %10 = arith.subf %9, %8 : vector<4x8x128xf32>
    %11 = math.exp %10 : vector<4x8x128xf32>
    %cst_8 = arith.constant 1.000000e+00 : f32
    %12 = vector.broadcast %cst_8 : f32 to vector<4x8x128xf32>
    %13 = arith.addf %12, %11 : vector<4x8x128xf32>
    %14 = math.log %13 : vector<4x8x128xf32>
    %15 = arith.addf %7, %14 : vector<4x8x128xf32>
    %16 = vector.extract_strided_slice %1 {offsets = [0, 0, 0], sizes = [1, 8, 128], strides = [1, 1, 1]} : vector<4x8x128xf32> to vector<1x8x128xf32>
    %17 = vector.shape_cast %16 : vector<1x8x128xf32> to vector<8x128xf32>
    %18 = vector.extract_strided_slice %1 {offsets = [1, 0, 0], sizes = [1, 8, 128], strides = [1, 1, 1]} : vector<4x8x128xf32> to vector<1x8x128xf32>
    %19 = vector.shape_cast %18 : vector<1x8x128xf32> to vector<8x128xf32>
    %20 = arith.maximumf %17, %19 : vector<8x128xf32>
    %21 = vector.extract_strided_slice %1 {offsets = [2, 0, 0], sizes = [1, 8, 128], strides = [1, 1, 1]} : vector<4x8x128xf32> to vector<1x8x128xf32>
    %22 = vector.shape_cast %21 : vector<1x8x128xf32> to vector<8x128xf32>
    %23 = arith.maximumf %20, %22 : vector<8x128xf32>
    %24 = vector.extract_strided_slice %1 {offsets = [3, 0, 0], sizes = [1, 8, 128], strides = [1, 1, 1]} : vector<4x8x128xf32> to vector<1x8x128xf32>
    %25 = vector.shape_cast %24 : vector<1x8x128xf32> to vector<8x128xf32>
    %26 = arith.maximumf %23, %25 : vector<8x128xf32>
    %27 = vector.shape_cast %26 : vector<8x128xf32> to vector<1x8x128xf32>
    %28 = vector.broadcast %27 : vector<1x8x128xf32> to vector<4x8x128xf32>
    %29 = arith.subf %1, %28 : vector<4x8x128xf32>
    %30 = math.exp %29 : vector<4x8x128xf32>
    %31 = vector.extract_strided_slice %30 {offsets = [0, 0, 0], sizes = [1, 8, 128], strides = [1, 1, 1]} : vector<4x8x128xf32> to vector<1x8x128xf32>
    %32 = vector.shape_cast %31 : vector<1x8x128xf32> to vector<8x128xf32>
    %33 = vector.extract_strided_slice %30 {offsets = [1, 0, 0], sizes = [1, 8, 128], strides = [1, 1, 1]} : vector<4x8x128xf32> to vector<1x8x128xf32>
    %34 = vector.shape_cast %33 : vector<1x8x128xf32> to vector<8x128xf32>
    %35 = arith.addf %32, %34 : vector<8x128xf32>
    %36 = vector.extract_strided_slice %30 {offsets = [2, 0, 0], sizes = [1, 8, 128], strides = [1, 1, 1]} : vector<4x8x128xf32> to vector<1x8x128xf32>
    %37 = vector.shape_cast %36 : vector<1x8x128xf32> to vector<8x128xf32>
    %38 = arith.addf %35, %37 : vector<8x128xf32>
    %39 = vector.extract_strided_slice %30 {offsets = [3, 0, 0], sizes = [1, 8, 128], strides = [1, 1, 1]} : vector<4x8x128xf32> to vector<1x8x128xf32>
    %40 = vector.shape_cast %39 : vector<1x8x128xf32> to vector<8x128xf32>
    %41 = arith.addf %38, %40 : vector<8x128xf32>
    %cst_9 = arith.constant 1.000000e+00 : f32
    %42 = vector.broadcast %cst_9 : f32 to vector<8x128xf32>
    %43 = arith.divf %42, %41 : vector<8x128xf32>
    %44 = vector.shape_cast %43 : vector<8x128xf32> to vector<1x8x128xf32>
    %45 = vector.broadcast %44 : vector<1x8x128xf32> to vector<4x8x128xf32>
    %46 = arith.mulf %30, %45 : vector<4x8x128xf32>
    %47 = arith.mulf %46, %3 : vector<4x8x128xf32>
    %48 = arith.mulf %46, %46 : vector<4x8x128xf32>
    %49 = arith.mulf %3, %3 : vector<4x8x128xf32>
    %50 = arith.addf %48, %49 : vector<4x8x128xf32>
    %51 = vector.extract_strided_slice %15 {offsets = [0, 0, 0], sizes = [1, 8, 128], strides = [1, 1, 1]} : vector<4x8x128xf32> to vector<1x8x128xf32>
    %52 = vector.shape_cast %51 : vector<1x8x128xf32> to vector<8x128xf32>
    %53 = vector.extract_strided_slice %15 {offsets = [1, 0, 0], sizes = [1, 8, 128], strides = [1, 1, 1]} : vector<4x8x128xf32> to vector<1x8x128xf32>
    %54 = vector.shape_cast %53 : vector<1x8x128xf32> to vector<8x128xf32>
    %55 = arith.addf %52, %54 : vector<8x128xf32>
    %56 = vector.extract_strided_slice %15 {offsets = [2, 0, 0], sizes = [1, 8, 128], strides = [1, 1, 1]} : vector<4x8x128xf32> to vector<1x8x128xf32>
    %57 = vector.shape_cast %56 : vector<1x8x128xf32> to vector<8x128xf32>
    %58 = arith.addf %55, %57 : vector<8x128xf32>
    %59 = vector.extract_strided_slice %15 {offsets = [3, 0, 0], sizes = [1, 8, 128], strides = [1, 1, 1]} : vector<4x8x128xf32> to vector<1x8x128xf32>
    %60 = vector.shape_cast %59 : vector<1x8x128xf32> to vector<8x128xf32>
    %61 = arith.addf %58, %60 : vector<8x128xf32>
    %c0_i32 = arith.constant 0 : i32
    %62 = arith.cmpi eq, %arg1, %c0_i32 : i32
    %63 = arith.extui %62 : i1 to i32
    %c0_i32_10 = arith.constant 0 : i32
    %64 = arith.cmpi ne, %63, %c0_i32_10 : i32
    scf.if %64 {
      %c0_15 = arith.constant 0 : index
      %c0_16 = arith.constant 0 : index
      %c0_17 = arith.constant 0 : index
      %71 = vector.load %arg7[%c0_15, %c0_16, %c0_17] : memref<4x8x128xf32, #tpu.memory_space<vmem>>, vector<4x8x128xf32>
      tpu.vector_store %arg7[%c0_15, %c0_16, %c0_17], %47 {strides = array<i32>} : memref<4x8x128xf32, #tpu.memory_space<vmem>>, vector<4x8x128xf32>,
      %c0_18 = arith.constant 0 : index
      %c0_19 = arith.constant 0 : index
      %c0_20 = arith.constant 0 : index
      %72 = vector.load %arg8[%c0_18, %c0_19, %c0_20] : memref<4x8x128xf32, #tpu.memory_space<vmem>>, vector<4x8x128xf32>
      tpu.vector_store %arg8[%c0_18, %c0_19, %c0_20], %50 {strides = array<i32>} : memref<4x8x128xf32, #tpu.memory_space<vmem>>, vector<4x8x128xf32>,
      %c0_21 = arith.constant 0 : index
      %c0_22 = arith.constant 0 : index
      %73 = vector.load %arg9[%c0_21, %c0_22] : memref<8x128xf32, #tpu.memory_space<vmem>>, vector<8x128xf32>
      tpu.vector_store %arg9[%c0_21, %c0_22], %61 {strides = array<i32>} : memref<8x128xf32, #tpu.memory_space<vmem>>, vector<8x128xf32>,
    } else {
    }
    %c0_i32_11 = arith.constant 0 : i32
    %65 = arith.cmpi sgt, %arg1, %c0_i32_11 : i32
    %66 = arith.extui %65 : i1 to i32
    %c0_i32_12 = arith.constant 0 : i32
    %67 = arith.cmpi ne, %66, %c0_i32_12 : i32
    scf.if %67 {
      %c0_15 = arith.constant 0 : index
      %c0_16 = arith.constant 0 : index
      %c0_17 = arith.constant 0 : index
      %71 = vector.load %arg7[%c0_15, %c0_16, %c0_17] : memref<4x8x128xf32, #tpu.memory_space<vmem>>, vector<4x8x128xf32>
      %72 = arith.addf %71, %47 : vector<4x8x128xf32>
      %c0_18 = arith.constant 0 : index
      %c0_19 = arith.constant 0 : index
      %c0_20 = arith.constant 0 : index
      %73 = vector.load %arg7[%c0_18, %c0_19, %c0_20] : memref<4x8x128xf32, #tpu.memory_space<vmem>>, vector<4x8x128xf32>
      tpu.vector_store %arg7[%c0_18, %c0_19, %c0_20], %72 {strides = array<i32>} : memref<4x8x128xf32, #tpu.memory_space<vmem>>, vector<4x8x128xf32>,
      %c0_21 = arith.constant 0 : index
      %c0_22 = arith.constant 0 : index
      %c0_23 = arith.constant 0 : index
      %74 = vector.load %arg8[%c0_21, %c0_22, %c0_23] : memref<4x8x128xf32, #tpu.memory_space<vmem>>, vector<4x8x128xf32>
      %75 = arith.addf %74, %50 : vector<4x8x128xf32>
      %c0_24 = arith.constant 0 : index
      %c0_25 = arith.constant 0 : index
      %c0_26 = arith.constant 0 : index
      %76 = vector.load %arg8[%c0_24, %c0_25, %c0_26] : memref<4x8x128xf32, #tpu.memory_space<vmem>>, vector<4x8x128xf32>
      tpu.vector_store %arg8[%c0_24, %c0_25, %c0_26], %75 {strides = array<i32>} : memref<4x8x128xf32, #tpu.memory_space<vmem>>, vector<4x8x128xf32>,
      %c0_27 = arith.constant 0 : index
      %c0_28 = arith.constant 0 : index
      %77 = vector.load %arg9[%c0_27, %c0_28] : memref<8x128xf32, #tpu.memory_space<vmem>>, vector<8x128xf32>
      %78 = arith.addf %77, %61 : vector<8x128xf32>
      %c0_29 = arith.constant 0 : index
      %c0_30 = arith.constant 0 : index
      %79 = vector.load %arg9[%c0_29, %c0_30] : memref<8x128xf32, #tpu.memory_space<vmem>>, vector<8x128xf32>
      tpu.vector_store %arg9[%c0_29, %c0_30], %78 {strides = array<i32>} : memref<8x128xf32, #tpu.memory_space<vmem>>, vector<8x128xf32>,
    } else {
    }
    %c0_i32_13 = arith.constant 0 : i32
    %68 = arith.cmpi eq, %arg1, %c0_i32_13 : i32
    %69 = arith.extui %68 : i1 to i32
    %c0_i32_14 = arith.constant 0 : i32
    %70 = arith.cmpi ne, %69, %c0_i32_14 : i32
    scf.if %70 {
      %c0_15 = arith.constant 0 : index
      %c0_16 = arith.constant 0 : index
      %c0_17 = arith.constant 0 : index
      %71 = vector.load %arg7[%c0_15, %c0_16, %c0_17] : memref<4x8x128xf32, #tpu.memory_space<vmem>>, vector<4x8x128xf32>
      %cst_18 = arith.constant dense<0.000000e+00> : vector<4x8xf32>
      %72 = vector.multi_reduction <add>, %71, %cst_18 [2] : vector<4x8x128xf32> to vector<4x8xf32>
      %cst_19 = arith.constant dense<0.000000e+00> : vector<4xf32>
      %73 = vector.multi_reduction <add>, %72, %cst_19 [1] : vector<4x8xf32> to vector<4xf32>
      %74 = vector.shape_cast %73 : vector<4xf32> to vector<4x1xf32>
      %c0_20 = arith.constant 0 : index
      %c0_21 = arith.constant 0 : index
      %c0_22 = arith.constant 0 : index
      %75 = vector.load %arg4[%c0_20, %c0_21, %c0_22] : memref<1x4x1xf32, #tpu.memory_space<vmem>>, vector<1x4x1xf32>
      %76 = vector.shape_cast %75 : vector<1x4x1xf32> to vector<4x1xf32>
      %77 = vector.shape_cast %74 : vector<4x1xf32> to vector<1x4x1xf32>
      tpu.vector_store %arg4[%c0_20, %c0_21, %c0_22], %77 {strides = array<i32>} : memref<1x4x1xf32, #tpu.memory_space<vmem>>, vector<1x4x1xf32>,
      %c0_23 = arith.constant 0 : index
      %c0_24 = arith.constant 0 : index
      %c0_25 = arith.constant 0 : index
      %78 = vector.load %arg8[%c0_23, %c0_24, %c0_25] : memref<4x8x128xf32, #tpu.memory_space<vmem>>, vector<4x8x128xf32>
      %cst_26 = arith.constant dense<0.000000e+00> : vector<4x8xf32>
      %79 = vector.multi_reduction <add>, %78, %cst_26 [2] : vector<4x8x128xf32> to vector<4x8xf32>
      %cst_27 = arith.constant dense<0.000000e+00> : vector<4xf32>
      %80 = vector.multi_reduction <add>, %79, %cst_27 [1] : vector<4x8xf32> to vector<4xf32>
      %81 = vector.shape_cast %80 : vector<4xf32> to vector<4x1xf32>
      %c0_28 = arith.constant 0 : index
      %c0_29 = arith.constant 0 : index
      %c0_30 = arith.constant 0 : index
      %82 = vector.load %arg5[%c0_28, %c0_29, %c0_30] : memref<1x4x1xf32, #tpu.memory_space<vmem>>, vector<1x4x1xf32>
      %83 = vector.shape_cast %82 : vector<1x4x1xf32> to vector<4x1xf32>
      %84 = vector.shape_cast %81 : vector<4x1xf32> to vector<1x4x1xf32>
      tpu.vector_store %arg5[%c0_28, %c0_29, %c0_30], %84 {strides = array<i32>} : memref<1x4x1xf32, #tpu.memory_space<vmem>>, vector<1x4x1xf32>,
      %c0_31 = arith.constant 0 : index
      %c0_32 = arith.constant 0 : index
      %85 = vector.load %arg9[%c0_31, %c0_32] : memref<8x128xf32, #tpu.memory_space<vmem>>, vector<8x128xf32>
      %cst_33 = arith.constant dense<0.000000e+00> : vector<8xf32>
      %86 = vector.multi_reduction <add>, %85, %cst_33 [1] : vector<8x128xf32> to vector<8xf32>
      %87 = vector.shape_cast %86 : vector<8xf32> to vector<8x1xf32>
      %cst_34 = arith.constant dense<0.000000e+00> : vector<1xf32>
      %88 = vector.multi_reduction <add>, %87, %cst_34 [0] : vector<8x1xf32> to vector<1xf32>
      %89 = vector.shape_cast %88 : vector<1xf32> to vector<1x1xf32>
      %c0_35 = arith.constant 0 : index
      %c0_36 = arith.constant 0 : index
      %c0_37 = arith.constant 0 : index
      %90 = vector.load %arg6[%c0_35, %c0_36, %c0_37] : memref<1x1x1xf32, #tpu.memory_space<vmem>>, vector<1x1x1xf32>
      %91 = vector.shape_cast %90 : vector<1x1x1xf32> to vector<1x1xf32>
      %92 = vector.shape_cast %89 : vector<1x1xf32> to vector<1x1x1xf32>
      tpu.vector_store %arg6[%c0_35, %c0_36, %c0_37], %92 {strides = array<i32>} : memref<1x1x1xf32, #tpu.memory_space<vmem>>, vector<1x1x1xf32>,
    } else {
    }
    return
  }
  func.func @transform_0(%arg0: i32, %arg1: i32) -> (i32, i32, i32, i32) {
    %c0_i32 = arith.constant 0 : i32
    %c0_i32_0 = arith.constant 0 : i32
    %c0_i32_1 = arith.constant 0 : i32
    return %arg0, %c0_i32, %arg1, %c0_i32_0 : i32, i32, i32, i32
  }
  func.func @transform_1(%arg0: i32, %arg1: i32) -> (i32, i32, i32, i32) {
    %c0_i32 = arith.constant 0 : i32
    %c0_i32_0 = arith.constant 0 : i32
    %c0_i32_1 = arith.constant 0 : i32
    return %arg0, %c0_i32, %arg1, %c0_i32_0 : i32, i32, i32, i32
  }
  func.func @transform_2(%arg0: i32, %arg1: i32) -> (i32, i32, i32) {
    %c0_i32 = arith.constant 0 : i32
    %c0_i32_0 = arith.constant 0 : i32
    %c0_i32_1 = arith.constant 0 : i32
    return %arg0, %c0_i32, %c0_i32_0 : i32, i32, i32
  }
  func.func @transform_3(%arg0: i32, %arg1: i32) -> (i32, i32, i32) {
    %c0_i32 = arith.constant 0 : i32
    %c0_i32_0 = arith.constant 0 : i32
    %c0_i32_1 = arith.constant 0 : i32
    return %arg0, %c0_i32, %c0_i32_0 : i32, i32, i32
  }
  func.func @transform_4(%arg0: i32, %arg1: i32) -> (i32, i32, i32) {
    %c0_i32 = arith.constant 0 : i32
    %c0_i32_0 = arith.constant 0 : i32
    %c0_i32_1 = arith.constant 0 : i32
    return %arg0, %c0_i32, %c0_i32_0 : i32, i32, i32
  }
}

</mosaic_0001>

<bundles_post_ra>
// kernel: tpu_custom_call.1
= control target key start
LH: loop header
LB: loop body
LE: loop exit
PB: predicated region body
PF: predicated region fallthrough
CT: control target
= control target key end

     0   :  { %10 = vsyncpa [#allocation6], 0  ;;  %s1165_s0 = inlined_call_operand.hbm [shape: f32[2,4,8,128], index: 0, kind: input, shape index: {}]   ;;  %s1166_s1 = inlined_call_operand.hbm [shape: f32[2,4,8,128], index: 1, kind: input, shape index: {}]   ;;  %s1167_s2 = inlined_call_operand.vmem [shape: f32[2,4,1], index: 2, kind: output, shape index: {0}]   ;;  %s1168_s3 = inlined_call_operand.vmem [shape: f32[2,4,1], index: 3, kind: output, shape index: {1}]   ;;  %s1169_s4 = inlined_call_operand.vmem [shape: f32[2,1,1], index: 4, kind: output, shape index: {2}]  }
   0x1   :  { %12 = vsyncpa [#allocation6 + $0x1], 0 }
   0x2   :  { %13 = vsyncpa [#allocation8], 0 }
   0x3   :  { %15 = vsyncpa [#allocation8 + $0x1], 0  ;;  %s941_s15 = smov 0   ;;  %s943_s16 = smov 0  }
   0x4   :  { %s945_s17 = smov 0   ;;  %s947_s18 = smov 0  }
   0x5   :  { %s949_s19 = smov 0   ;;  %s951_s20 = smov 0  }
   0x6 LB: > { %s689_s21 = sadd.s32 4294967295, %s910_s20   ;;  %s33_s22 = sadd.s32 1, %s906_s19  ;;  %s910_s20 = sphi %s951_s20, %s21_s20   ;;  %s906_s19 = sphi %s949_s19, %s1180_s19   ;;  %s902_s18 = sphi %s947_s18, %s1179_s18   ;;  %s898_s17 = sphi %s945_s17, %s1178_s17   ;;  %s894_s16 = sphi %s943_s16, %s1177_s16   ;;  %s890_s15 = sphi %s941_s15, %s1176_s15  }
   0x7   : > { %p35_p0 = scmp.ge.s32.totalorder %s33_s22, 2  ;;  %s42_s23 = sadd.s32 1, %s898_s17 }
   0x8   : > { %p49_p1 = scmp.ne.s32.totalorder %s898_s17, %s894_s16  ;;  %p50_p2 = scmp.eq.s32.totalorder %s910_s20, 0 }
   0x9   : > { %s1182_s22 = smov (%p35_p0, %s33_s22), 0  ;;  %p55_p4 = scmp.ne.s32.totalorder %s894_s16, %s890_s15 }
   0xa   : > { %p977_p3 = por %p50_p2, %p49_p1  ;;  %s37_s25 = ssub.s32 %s906_s19, %s1182_s22 }
   0xb   : > { %p56_p5 = scmp.eq.s32.totalorder %s689_s21, 0  ;;  %p40_p6 = scmp.eq.s32.totalorder %s37_s25, 0 }
   0xc   : > { %p719_p8 = scmp.lt.s32.totalorder %s910_s20, 2  ;;  %s993_s28 = sand.u32 1, %s898_s17  }
   0xd   : > { %p984_p7 = por %p56_p5, %p55_p4  ;;  %s706_s29 = sshll.u32 %s906_s19, 9 }
   0xe   : > { %s990_s27 = scalar_select %p40_p6, %s898_s17, %s42_s23  }
   0xf   : > { %s1172_s26 = scalar_select %p984_p7, 1, 0 }
  0x10   : > { %s693_s30 = sshll.u32 %s993_s28, 5  ;;  %s1002_s7 = scalar_lea.hbm %s1165_s0, %s706_s29 }
  0x11   : > { %s189_s8 = scalar_lea.vmem [#allocation5], %s693_s30  ;;  %p1008_p9 = pnand %p719_p8, %p977_p3 }
  0x12   : > { %s197_s9 = sshll.u32 %s189_s8, 4  ;;  %s186_s11 = scalar_lea.sflag [#allocation6], %s993_s28  ;;  %s1012_s9 = int_to_ptr.vmem [resolvable:$true] %s197_s9 }
  0x13   : > { %s796_s12 = scalar_lea.hbm %s1002_s7, 512  ;;  %p798_p11 = pneg %p1008_p9 }
  0x14   : > { %p797_p10 = scmp.ne.s32.totalorder %s1002_s7, %s796_s12  ;;  %s801_s15 = scalar_lea.hbm %s1165_s0, 1024 }
  0x15   : > { %p802_p0 = scmp.lt.u32.totalorder %s1002_s7, %s1165_s0  ;;  %p803_p1 = scmp.lt.u32.totalorder %s801_s15, %s796_s12 }
  0x16   : > { %p799_p12 = pnand %p798_p11, %p797_p10  ;;  %p805_p3 = scmp.lt.u32.totalorder %s796_s12, %s1002_s7 }
  0x17   : > { %p804_p2 = por %p803_p1, %p802_p0 }
  0x18   : > { %p800_p13 = pneg %p799_p12 }
  0x19   : > { %p806_p4 = por %p805_p3, %p804_p2 }
  0x1b   : > { %p807_p5 = pnand %p806_p4, %p800_p13 }
  0x1d   : > { %810 = shalt.err (!%p807_p5)
}
  0x1e   : > { %s811_s24 = scalar_lea.vmem %s1012_s9, 512  ;;  %s912_s25 = smov [#allocation5]  }
  0x1f   : > { %p812_p6 = scmp.ne.s32.totalorder %s1012_s9, %s811_s24  ;;  %s816_s5 = sshll.u32 %s912_s25, 4  ;;  %s817_s5 = int_to_ptr.vmem [resolvable:$false] %s816_s5 }
  0x20   : > { %s818_s6 = scalar_lea.vmem %s817_s5, 1024  ;;  %p819_p12 = scmp.lt.s32.totalorder %s1012_s9, %s817_s5 }
  0x21   : > { %p814_p8 = pnand %p812_p6, %p798_p11  ;;  %p820_p0 = scmp.lt.s32.totalorder %s818_s6, %s811_s24 }
  0x23   : > { %p815_p10 = pneg %p814_p8  ;;  %p821_p1 = por %p820_p0, %p819_p12 }
  0x25   : > { %p822_p2 = pnand %p821_p1, %p815_p10 }
  0x27   : > { %825 = shalt.err (!%p822_p2)
}
  0x28   : > { %s913_s8 = smov 128   ;;  %s914_s12 = smov 8  }
  0x29   : > { %715 = dma.hbm_to_vmem [thread:$0]  (!%p1008_p9), %s1002_s7, 512, %s1012_s9, %s186_s11, %s913_s8, %s913_s8, %s914_s12  }
  0x2a   : > { %p699_p13 = scmp.ge.s32.totalorder %s910_s20, 1  ;;  %p227_p3 = scmp.lt.s32.totalorder %s910_s20, 3 }
  0x2b   : > { %s1056_s21 = scalar_lea.hbm %s1166_s1, %s706_s29  ;;  %s211_s23 = scalar_lea.vmem [#allocation7], %s693_s30 }
  0x2c   : > { %p1047_p4 = pnand %p699_p13, %p227_p3  ;;  %s219_s24 = sshll.u32 %s211_s23, 4  ;;  %s1060_s24 = int_to_ptr.vmem [resolvable:$true] %s219_s24 }
  0x2d   : > { %s208_s7 = scalar_lea.sflag [#allocation8], %s993_s28  ;;  %s826_s9 = scalar_lea.hbm %s1056_s21, 512 }
  0x2e   : > { %p827_p5 = scmp.ne.s32.totalorder %s1056_s21, %s826_s9  ;;  %s831_s29 = scalar_lea.hbm %s1166_s1, 1024 }
  0x2f   : > { %p832_p10 = scmp.lt.u32.totalorder %s1056_s21, %s1166_s1  ;;  %p833_p12 = scmp.lt.u32.totalorder %s831_s29, %s826_s9 }
  0x30   : > { %p829_p6 = pnand %p827_p5, %p798_p11  ;;  %p835_p1 = scmp.lt.u32.totalorder %s826_s9, %s1056_s21 }
  0x31   : > { %p834_p0 = por %p833_p12, %p832_p10 }
  0x32   : > { %p830_p8 = pneg %p829_p6 }
  0x33   : > { %p836_p2 = por %p835_p1, %p834_p0 }
  0x35   : > { %p837_p13 = pnand %p836_p2, %p830_p8 }
  0x37   : > { %840 = shalt.err (!%p837_p13)
}
  0x38   : > { %s841_s30 = scalar_lea.vmem %s1060_s24, 512  ;;  %s915_s14 = smov [#allocation7]  }
  0x39   : > { %p842_p3 = scmp.ne.s32.totalorder %s1060_s24, %s841_s30  ;;  %s846_s15 = sshll.u32 %s915_s14, 4  ;;  %s847_s15 = int_to_ptr.vmem [resolvable:$false] %s846_s15 }
  0x3a   : > { %s848_s23 = scalar_lea.vmem %s847_s15, 1024  ;;  %p849_p7 = scmp.lt.s32.totalorder %s1060_s24, %s847_s15 }
  0x3b   : > { %p844_p5 = pnand %p842_p3, %p798_p11  ;;  %p850_p10 = scmp.lt.s32.totalorder %s848_s23, %s841_s30 }
  0x3d   : > { %p845_p6 = pneg %p844_p5  ;;  %p851_p12 = por %p850_p10, %p849_p7 }
  0x3f   : > { %p852_p0 = pnand %p851_p12, %p845_p6 }
  0x41   : > { %855 = shalt.err (!%p852_p0)
}
  0x42   : > { %718 = dma.hbm_to_vmem [thread:$0]  (!%p1008_p9), %s1056_s21, 512, %s1060_s24, %s208_s7, %s913_s8, %s913_s8, %s914_s12  }
  0x43   : > { %231 = sbr.rel (%p1047_p4) target bundleno = 424 (0x1a8), region = 28  ;;  %s233_s9 = sand.u32 (!%p1047_p4), 1, %s894_s16  }
  0x44   : > { %s700_s11 = sshll.u32 (!%p1047_p4), %s233_s9, 5  ;;  %s234_s25 = scalar_lea.sflag (!%p1047_p4), [#allocation6], %s233_s9 }
  0x45   : > { %s237_s29 = scalar_lea.vmem (!%p1047_p4), [#allocation5], %s700_s11  ;;  %p1175_p7 = scmp.ne.s32.totalorder (!%p1047_p4), %s1172_s26, 0 }
  0x4a   : > { %881 = dma.done.wait (%p1175_p7), %s234_s25, 512  }
  0x4b   : > { %883 = vsyncadd (%p1175_p7), %s234_s25, 4294966784  ;;  %s243_s10 = scalar_lea.sflag [#allocation8], %s233_s9  ;;  %s1098_s28 = scalar_lea.vmem [#allocation7], %s700_s11 }
  0x4c   : > { %885 = dma.done.wait (%p1175_p7), %s243_s10, 512  }
  0x4d   : > { %887 = vsyncadd (%p1175_p7), %s243_s10, 4294966784  ;;  %v1104_v0 = vld [vmem:[%s237_s29] sm:$0xff]  ;;  %v1106_v1 = vld [vmem:[%s237_s29 + $0x8] sm:$0xff]  ;;  %vm469_vm0 = vcmask 1041409   ;;  %vm471_vm1 = vcmask 1042434   ;;  %vm473_vm2 = vcmask 1043459  }
  0x4e   : > { %v1108_v2 = vld [vmem:[%s237_s29 + $0x10] sm:$0xff]  ;;  %v345_v3 = vmax.f32 %v1104_v0, %v1106_v1  ;;  %v1112_v4 = vld [vmem:[%s237_s29 + $0x18] sm:$0xff]  ;;  %v313_v15 = vand.u32 2147483647, %v1104_v0  ;;  %v314_v16 = vand.u32 2147483647, %v1106_v1 }
  0x4f   : > { %v315_v17 = vand.u32 2147483647, %v1108_v2  ;;  %v316_v22 = vand.u32 2147483647, %v1112_v4  ;;  %v297_v39 = vld [vmem:[%s1098_s28] sm:$0xff]  ;;  %v298_v43 = vld [vmem:[%s1098_s28 + $0x8] sm:$0xff] }
  0x50   : > { %v346_v5 = vmax.f32 %v345_v3, %v1108_v2  ;;  %v317_v18 = vsub.f32 0.0, %v313_v15  ;;  %v318_v19 = vsub.f32 0.0, %v314_v16  ;;  %v377_v46 = vmul.f32 %v297_v39, %v297_v39  ;;  %v299_v55 = vld [vmem:[%s1098_s28 + $0x10] sm:$0xff]  ;;  %p282_p9 = scmp.lt.s32.totalorder %s902_s18, 1 }
  0x51   : > { %v319_v23 = vsub.f32 0.0, %v315_v17  ;;  %v320_v29 = vsub.f32 0.0, %v316_v22  ;;  %v301_v48 = vmax.f32 %v1104_v0, 0.0  ;;  %v305_v49 = vmul.f32 %v297_v39, %v1104_v0 }
  0x52   : > { %v347_v6 = vmax.f32 %v346_v5, %v1112_v4  ;;  %v321_v24 = vmul.f32 1.442695, %v317_v18  ;;  %v323_v27 = vmul.f32 1.442695, %v318_v19  ;;  %v378_v54 = vmul.f32 %v298_v43, %v298_v43  ;;  %v300_v5 = vld [vmem:[%s1098_s28 + $0x18] sm:$0xff]  ;;  %s1184_s18 = smov (!%p282_p9, %s902_s18), 1 }
  0x53   : > { %v325_v30 = vmul.f32 1.442695, %v319_v23  ;;  %v327_v32 = vmul.f32 1.442695, %v320_v29  ;;  %v302_v56 = vmax.f32 %v1106_v1, 0.0  ;;  %v306_v57 = vmul.f32 %v298_v43, %v1106_v1  ;;  %s292_s12 = scalar_lea.vmem %s1169_s4, %s1184_s18  ;;  %s702_s13 = sshll.u32 %s1184_s18, 2 }
  0x54   : > { %v348_v7 = vsub.f32 %v1104_v0, %v347_v6  ;;  %v349_v8 = vsub.f32 %v1106_v1, %v347_v6  ;;  %v350_v9 = vsub.f32 %v1108_v2, %v347_v6  ;;  %v351_v10 = vsub.f32 %v1112_v4, %v347_v6  ;;  %s285_s7 = scalar_lea.vmem %s1167_s2, %s702_s13  ;;  %s289_s30 = scalar_lea.vmem %s1168_s3, %s702_s13 }
  0x55   : > { %v379_v61 = vmul.f32 %v299_v55, %v299_v55  ;;  %v309_v63 = vsub.f32 %v301_v48, %v305_v49  ;;  %v307_v3 = vmul.f32 %v299_v55, %v1108_v2  ;;  %v303_v1 = vmax.f32 %v1108_v2, 0.0 }
  0x56   : > { %v352_v11 = vmul.f32 1.442695, %v348_v7  ;;  %v354_v12 = vmul.f32 1.442695, %v349_v8  ;;  %v356_v13 = vmul.f32 1.442695, %v350_v9  ;;  %v310_v7 = vsub.f32 %v302_v56, %v306_v57 }
  0x57   : > { %v358_v14 = vmul.f32 1.442695, %v351_v10  ;;  %v308_v10 = vmul.f32 %v300_v5, %v1112_v4  ;;  %v380_v15 = vmul.f32 %v300_v5, %v300_v5  ;;  %v304_v17 = vmax.f32 %v1112_v4, 0.0 }
  0x58   : > { %770 = vpow2.f32 %v352_v11  ;;  %v311_v18 = vsub.f32 %v303_v1, %v307_v3  ;;  %v451_v4 = vlaneseq  ;;  %vm476_vm3 = vcmask 60416  }
  0x59   : > { %772 = vpow2.f32 %v354_v12  ;;  %vm531_vm4 = vcmask 0   ;;  %vm480_vm5 = vcmask 3072  }
  0x5a   : > { %774 = vpow2.f32 %v356_v13 }
  0x5b   : > { %776 = vpow2.f32 %v358_v14 }
  0x5c   : > { %778 = vpow2.f32 %v321_v24  ;;  %v312_v24 = vsub.f32 %v304_v17, %v308_v10 }
  0x5d   : > { %780 = vpow2.f32 %v323_v27 }
  0x5e   : > { %782 = vpow2.f32 %v325_v30 }
  0x5f   : > { %784 = vpow2.f32 %v327_v32 }
  0x62   : > { %v771_v20 = vpop.eup %770 }
  0x63   : > { %v773_v21 = vpop.eup %772 }
  0x64   : > { %v775_v25 = vpop.eup %774  ;;  %v360_v26 = vadd.f32 %v773_v21, %v771_v20 }
  0x65   : > { %v777_v28 = vpop.eup %776 }
  0x66   : > { %v361_v31 = vadd.f32 %v775_v25, %v360_v26  ;;  %v779_v34 = vpop.eup %778 }
  0x67   : > { %v781_v35 = vpop.eup %780  ;;  %v329_v36 = vadd.f32 1.0, %v779_v34  ;;  %v454_v34 = vshrl.u32 %v451_v4, 7 }
  0x68   : > { %v362_v33 = vadd.f32 %v777_v28, %v361_v31  ;;  %v783_v37 = vpop.eup %782  ;;  %v330_v38 = vadd.f32 1.0, %v781_v35 }
  0x69   : > { %v331_v40 = vadd.f32 1.0, %v783_v37  ;;  %v785_v41 = vpop.eup %784 }
  0x6a   : > { %786 = vrcp.f32 %v362_v33  ;;  %v332_v44 = vadd.f32 1.0, %v785_v41  ;;  %v452_v33 = vand.u32 127, %v451_v4 }
  0x6b   : > { %788 = vlog2.f32 %v329_v36 }
  0x6c   : > { %790 = vlog2.f32 %v330_v38  ;;  %v455_v37 = vsub.s32 %v452_v33, %v454_v34 }
  0x6d   : > { %792 = vlog2.f32 %v331_v40 }
  0x6e   : > { %794 = vlog2.f32 %v332_v44 }
  0x74   : > { %v787_v42 = vpop.eup %786 }
  0x75   : > { %v365_v45 = vmul.f32 %v787_v42, %v771_v20  ;;  %v366_v47 = vmul.f32 %v787_v42, %v773_v21  ;;  %v367_v50 = vmul.f32 %v787_v42, %v775_v25  ;;  %v368_v62 = vmul.f32 %v787_v42, %v777_v28  ;;  %v789_v6 = vpop.eup %788 }
  0x76   : > { %v791_v8 = vpop.eup %790  ;;  %v334_v11 = vmul.f32 0.6931472, %v789_v6 }
  0x77   : > { %v369_v51 = vmul.f32 %v365_v45, %v297_v39  ;;  %v373_v52 = vmul.f32 %v365_v45, %v365_v45  ;;  %v374_v53 = vmul.f32 %v366_v47, %v366_v47  ;;  %v370_v59 = vmul.f32 %v366_v47, %v298_v43  ;;  %v793_v12 = vpop.eup %792 }
  0x78   : > { %v375_v60 = vmul.f32 %v367_v50, %v367_v50  ;;  %v371_v9 = vmul.f32 %v367_v50, %v299_v55  ;;  %v376_v14 = vmul.f32 %v368_v62, %v368_v62  ;;  %v336_v16 = vmul.f32 0.6931472, %v791_v8  ;;  %v795_v21 = vpop.eup %794 }
  0x79   : > { %439 = vadd.xlane.f32.xlu0 %v369_v51  ;;  %v381_v58 = vadd.f32 %v377_v46, %v373_v52  ;;  %v382_v0 = vadd.f32 %v378_v54, %v374_v53  ;;  %v338_v19 = vmul.f32 0.6931472, %v793_v12  ;;  %v341_v20 = vadd.f32 %v334_v11, %v309_v63 }
  0x7a   : > { %v383_v13 = vadd.f32 %v379_v61, %v375_v60  ;;  %v342_v22 = vadd.f32 %v336_v16, %v310_v7  ;;  %v372_v23 = vmul.f32 %v368_v62, %v300_v5  ;;  %v340_v25 = vmul.f32 0.6931472, %v795_v21 }
  0x7b   : > { %486 = vadd.xlane.f32.xlu1 %v381_v58  ;;  %v343_v26 = vadd.f32 %v338_v19, %v311_v18  ;;  %v384_v27 = vadd.f32 %v380_v15, %v376_v14 }
  0x7c   : > { %v385_v2 = vadd.f32 %v342_v22, %v341_v20  ;;  %v344_v28 = vadd.f32 %v340_v25, %v312_v24 }
  0x7d   : > { %441 = vadd.xlane.f32.xlu0 %v370_v59 }
  0x7e   : > { %v386_v29 = vadd.f32 %v385_v2, %v343_v26 }
  0x7f   : > { %488 = vadd.xlane.f32.xlu1 %v382_v0 }
  0x80   : > { %v387_v30 = vadd.f32 %v386_v29, %v344_v28 }
  0x81   : > { %443 = vadd.xlane.f32.xlu0 %v371_v9 }
  0x83   : > { %490 = vadd.xlane.f32.xlu1 %v383_v13 }
  0x85   : > { %445 = vadd.xlane.f32.xlu0 %v372_v23 }
  0x87   : > { %492 = vadd.xlane.f32.xlu1 %v384_v27 }
  0x89   : > { %523 = vadd.xlane.f32.xlu0 %v387_v30 }
 0x106   : > { %v440_v31 = vpop.xlane.xlu0 %439 }
 0x107   : > { %v456_v42 = vrot.slane %v440_v31, %v455_v37 }
 0x108   : > { %v487_v32 = vpop.xlane.xlu1 %486 }
 0x109   : > { %v501_v46 = vrot.slane %v487_v32, %v455_v37 }
 0x10a   : > { %v442_v35 = vpop.xlane.xlu0 %441 }
 0x10b   : > { %v460_v39 = vrot.slane %v442_v35, %v455_v37 }
 0x10c   : > { %v489_v36 = vpop.xlane.xlu1 %488 }
 0x10d   : > { %v505_v43 = vrot.slane %v489_v36, %v455_v37  ;;  %v470_v47 = vsel %vm469_vm0, %v460_v39, %v456_v42 }
 0x10e   : > { %v444_v38 = vpop.xlane.xlu0 %443 }
 0x10f   : > { %v464_v40 = vrot.slane %v444_v38, %v455_v37  ;;  %v514_v51 = vsel %vm469_vm0, %v505_v43, %v501_v46 }
 0x110   : > { %v491_v41 = vpop.xlane.xlu1 %490 }
 0x111   : > { %v509_v44 = vrot.slane %v491_v41, %v455_v37  ;;  %v472_v50 = vsel %vm471_vm1, %v464_v40, %v470_v47 }
 0x112   : > { %v446_v45 = vpop.xlane.xlu0 %445 }
 0x113   : > { %v468_v48 = vrot.slane %v446_v45, %v455_v37  ;;  %v515_v55 = vsel %vm471_vm1, %v509_v44, %v514_v51 }
 0x114   : > { %v493_v49 = vpop.xlane.xlu1 %492 }
 0x115   : > { %v513_v52 = vrot.slane %v493_v49, %v455_v37  ;;  %v474_v53 = vsel %vm473_vm2, %v468_v48, %v472_v50 }
 0x116   : > { %v477_v54 = vsel %vm476_vm3, %v474_v53, 0.0  ;;  %v524_v56 = vpop.xlane.xlu0 %523 }
 0x117   : > { %478 = vadd.xlane.f32.xlu1 %v477_v54  ;;  %v516_v57 = vsel %vm473_vm2, %v513_v52, %v515_v55  ;;  %v525_v58 = vrot.slane %v524_v56, 4 }
 0x118   : > { %v518_v59 = vsel %vm476_vm3, %v516_v57, 0.0 }
 0x119   : > { %519 = vadd.xlane.f32.xlu0 %v518_v59  ;;  %v526_v60 = vadd.f32 %v525_v58, %v524_v56 }
 0x11b   : > { %v527_v61 = vrot.slane %v526_v60, 2 }
 0x11d   : > { %v528_v62 = vadd.f32 %v527_v61, %v526_v60 }
 0x11f   : > { %v529_v63 = vrot.slane %v528_v62, 1 }
 0x121   : > { %v530_v0 = vadd.f32 %v529_v63, %v528_v62 }
 0x123   : > { %532 = vst.msk [vmem:[%s292_s12] sm:$0x1] %vm531_vm4, %v530_v0 }
 0x1a4   : > { %v479_v3 = vpop.xlane.xlu1 %478 }
 0x1a5   : > { %481 = vst.msk [vmem:[%s285_s7] sm:$0xf] %vm480_vm5, %v479_v3 }
 0x1a6   : > { %v520_v5 = vpop.xlane.xlu0 %519 }
 0x1a7   : > { %521 = vst.msk [vmem:[%s289_s30] sm:$0xf] %vm480_vm5, %v520_v5 }
 0x1a8 PF: > { %s21_s20 = sadd.s32 1, %s910_s20   ;;  %s1176_s15 = smov %s894_s16 }
 0x1a9   : > { %p18_p11 = scmp.ge.s32.totalorder %s21_s20, 4   ;;  %s1177_s16 = smov %s898_s17 }
 0x1aa   : > { %s1178_s17 = smov %s990_s27  ;;  %s1179_s18 = smov %s906_s19 }
 0x1ab   : > { %s1180_s19 = smov %s1182_s22  ;;  %20 = sbr.rel (!%p18_p11) target bundleno = 6 (0x6), region = 117 }
 0x1b2   :  { %578 = vsyncpa [#allocation6], 1 }
 0x1b3   :  { %580 = vsyncpa [#allocation6 + $0x1], 1 }
 0x1b4   :  { %581 = vsyncpa [#allocation8], 1 }
 0x1b5   :  { %583 = vsyncpa [#allocation8 + $0x1], 1 }

</bundles_post_ra>
